<compile_context>
chip_gen: v5e
topology: v5e:2x2
jax: 0.10.0
libtpu: 0.0.40
codegen_flags: <defaults>
</compile_context>

<pallas_src>
import jax
import jax.numpy as jnp
from jax.experimental import pallas as pl
from jax.experimental.pallas import tpu as pltpu


def _copy_kernel(x_ref, o_ref):
    # Pure pass-through: copy the current VMEM tile to the output tile.
    o_ref[...] = x_ref[...]


def _choose_layout(total: int):
    """Pick a lane-dense (rows, lane) factorization of `total` elements.

    Prefers lane >= 128 (unmasked stores) with rows a multiple of 8 (full
    sublane utilization).  Returns None if total is not a multiple of 128.
    """
    fallback = None
    for lane in (2048, 1024, 512, 256, 128):
        if total % lane == 0:
            rows = total // lane
            if rows % 8 == 0:
                return rows, lane
            if fallback is None:
                fallback = (rows, lane)
    return fallback


def _pallas_identity_copy(x: jax.Array) -> jax.Array:
    """Materializing identity copy through an optimized Pallas kernel."""
    orig_shape = x.shape
    total = x.size
    itemsize = jnp.dtype(x.dtype).itemsize

    layout = _choose_layout(total)
    if layout is None:
        # Not 128-divisible: single full-array block is always legal
        # (block_shape == full array dims), so keep it simple and exact.
        flat = x.reshape(1, total)
        out = pl.pallas_call(
            _copy_kernel,
            out_shape=jax.ShapeDtypeStruct(flat.shape, flat.dtype),
            in_specs=[pl.BlockSpec(flat.shape, lambda: (0, 0))],
            out_specs=pl.BlockSpec(flat.shape, lambda: (0, 0)),
            input_output_aliases={0: 0},
        )(flat)
        return out.reshape(orig_shape)

    rows, lane = layout
    x2d = x.reshape(rows, lane)

    # ~2 MiB blocks: large enough to amortize per-step overhead (~0.35 us),
    # small enough that double-buffered in+out (4 buffers ~= 8 MiB) fits the
    # default scoped VMEM limit on v5e/v6e/v7x.
    target_block_bytes = 2 * 1024 * 1024
    tm = (target_block_bytes // (lane * itemsize)) // 8 * 8
    tm = max(8, min(rows, tm))
    if rows % tm != 0:
        tm = rows  # keep blocks exact; avoids partial-block edge cases

    grid = (rows // tm,)

    out2d = pl.pallas_call(
        _copy_kernel,
        out_shape=jax.ShapeDtypeStruct((rows, lane), x.dtype),
        grid=grid,
        in_specs=[pl.BlockSpec((tm, lane), lambda i: (i, 0))],
        out_specs=pl.BlockSpec((tm, lane), lambda i: (i, 0)),
        input_output_aliases={0: 0},
        compiler_params=pltpu.CompilerParams(
            # Row blocks are independent -> shard across both TCs on v7x.
            dimension_semantics=("parallel",),
            # Explicit cap keeps us safe on v7x's 64 MiB physical VMEM.
            vmem_limit_bytes=32 * 1024 * 1024,
        ),
    )(x2d)
    return out2d.reshape(orig_shape)


def base_builder_forward(x: jax.Array, materialize: bool = False) -> jax.Array:
    """Pallas equivalent of BaseBuilder.forward (a no-op).

    Default path: return x unchanged (zero HBM traffic, zero kernel launch).
    materialize=True: run the optimized Pallas identity-copy kernel instead.
    """
    if not materialize:
        return x
    return _pallas_identity_copy(x)


if __name__ == "__main__":
    # BaseBuilder.__init__ defines no parameters, so there is nothing to
    # initialize deterministically beyond the example input.
    key = jax.random.PRNGKey(0)
    x = jax.random.normal(key, (2, 4, 16, 16), dtype=jnp.float32)  # NCHW

    # Faithful no-op path: zero HBM traffic.
    y_fast = base_builder_forward(x)
    assert y_fast is x

    # Pallas identity-copy path: exercise the kernel once on TPU.
    y = base_builder_forward(x, materialize=True)
    y = jax.block_until_ready(y)

    # Identity semantics check (the reference forward computes nothing; the
    # pass-through must not perturb the data).
    assert y.shape == x.shape
    assert jnp.array_equal(y, x)

    print("KERNEL_OK")
</pallas_src>

<mosaic_0001>
module attributes {stable_mosaic.version = 11 : i64} {
  func.func @_copy_kernel(%arg0: i32, %arg1: memref<8x256xf32, #tpu.memory_space<vmem>>, %arg2: memref<8x256xf32, #tpu.memory_space<vmem>>) attributes {dimension_semantics = [#tpu.dimension_semantics<parallel>], iteration_bounds = array<i64: 1>, scalar_prefetch = 0 : i64, scratch_operands = 0 : i64, tpu.core_type = #tpu.core_type<tc>, window_params = [{transform_indices = @transform_0, window_bounds = array<i64: 8, 256>}, {transform_indices = @transform_1, window_bounds = array<i64: 8, 256>}]} {
    %c0 = arith.constant 0 : index
    %c0_0 = arith.constant 0 : index
    %0 = vector.load %arg1[%c0, %c0_0] : memref<8x256xf32, #tpu.memory_space<vmem>>, vector<8x256xf32>
    %c0_1 = arith.constant 0 : index
    %c0_2 = arith.constant 0 : index
    %1 = vector.load %arg2[%c0_1, %c0_2] : memref<8x256xf32, #tpu.memory_space<vmem>>, vector<8x256xf32>
    tpu.vector_store %arg2[%c0_1, %c0_2], %0 {strides = array<i32>} : memref<8x256xf32, #tpu.memory_space<vmem>>, vector<8x256xf32>,
    return
  }
  func.func @transform_0(%arg0: i32) -> (i32, i32) {
    %c0_i32 = arith.constant 0 : i32
    %c0_i32_0 = arith.constant 0 : i32
    return %arg0, %c0_i32 : i32, i32
  }
  func.func @transform_1(%arg0: i32) -> (i32, i32) {
    %c0_i32 = arith.constant 0 : i32
    %c0_i32_0 = arith.constant 0 : i32
    return %arg0, %c0_i32 : i32, i32
  }
}

</mosaic_0001>

<bundles_post_ra>
// kernel: tpu_custom_call.1
= control target key start
LH: loop header
LB: loop body
LE: loop exit
PB: predicated region body
PF: predicated region fallthrough
CT: control target
= control target key end

     0   :  { %6 = vsyncpa [#allocation3], 0  ;;  %s116_s0 = inlined_call_operand.hbm [shape: f32[8,256], index: 0, kind: input, shape index: {}, may-alias: {0,1}]   ;;  %s117_s1 = inlined_call_operand.hbm [shape: f32[8,256], index: 1, kind: output, shape index: {}, may-alias: {0,1}]  }
   0x1   :  { %7 = vsyncpa [#allocation4], 0  ;;  %s13_s8 = sshll.u32 %s116_s0, 4  ;;  %s98_s9 = smov [#allocation2]   ;;  %s14_s8 = int_to_ptr.hbm [resolvable:$true] %s13_s8 }
   0x2   :  { %s15_s10 = sshll.u32 %s98_s9, 4  ;;  %s16_s10 = int_to_ptr.vmem [resolvable:$true] %s15_s10 }
   0x3   :  { %18 = dma.hbm_to_vmem [thread:$0]  %s14_s8, 256, %s16_s10, [#allocation3]  }
   0x4   :  { %94 = dma.done.wait [#allocation3], 256  }
   0x5   :  { %95 = vsyncadd [#allocation3], 4294967040  ;;  %s99_s11 = smov [#allocation5]   ;;  %s34_s15 = sshll.u32 %s117_s1, 4  ;;  %v23_v0 = vld [vmem:[#allocation2] sm:$0xff]  ;;  %v24_v1 = vld [vmem:[#allocation2 + $0x8] sm:$0xff]  ;;  %s35_s15 = int_to_ptr.hbm [resolvable:$true] %s34_s15 }
   0x6   :  { %s32_s12 = sshll.u32 %s99_s11, 4  ;;  %25 = vst [vmem:[#allocation5] sm:$0xff] %v23_v0  ;;  %s33_s12 = int_to_ptr.vmem [resolvable:$true] %s32_s12 }
   0x7   :  { %26 = vst [vmem:[#allocation5 + $0x8] sm:$0xff] %v24_v1 }
   0x8   :  { %37 = dma.vmem_to_hbm [thread:$0]  %s33_s12, 256, %s35_s15, [#allocation4]  }
   0x9   :  { %96 = dma.done.wait [#allocation4], 256  }
   0xa   :  { %97 = vsyncadd [#allocation4], 4294967040 }
   0xb   :  { %42 = vsyncpa [#allocation3], 1 }
   0xc   :  { %43 = vsyncpa [#allocation4], 1 }

</bundles_post_ra>
